<compile_context>
chip_gen: v7x
topology: tpu7x:2x2x1
jax: 0.10.0
libtpu: 0.0.40
codegen_flags: <defaults>
</compile_context>

<pallas_src>
import functools

import jax
import jax.numpy as jnp
from jax import lax
from jax.experimental import pallas as pl
from jax.experimental.pallas import tpu as pltpu


def estimate_adj_forward(estimated_adj):
    """EstimateAdj.forward() is the identity on its (u, i) parameter."""
    return estimated_adj


def _round_up(x, m):
    return (x + m - 1) // m * m


# ----------------------------------------------------------------------------
# Kernel 1 (small N, primary for the demo size): fully fused LightGCN forward.
#   A copied once (single-buffered) into VMEM scratch, E^T resident, layer
#   loop + layer mean inside one kernel, transposed lane-dense (D, N) layout.
# ----------------------------------------------------------------------------
def _fused_lightgcn_kernel(adj_hbm_ref, egoT_ref, outT_ref, adj_vmem,
                           *, n_layers, precision):
    # One manual copy of A: avoids BlockSpec double-buffering of the N^2 tile.
    pltpu.sync_copy(adj_hbm_ref, adj_vmem)
    a = adj_vmem[...]
    e0 = egoT_ref[...].astype(jnp.float32)          # (D, N), lane-dense

    def body(_, carry):
        e, acc = carry
        # A symmetric  =>  E_{k+1}^T = E_k^T @ A   (lane-dense output).
        e_next = jnp.dot(e, a, preferred_element_type=jnp.float32,
                         precision=precision)
        return e_next, acc + e_next

    _, acc = lax.fori_loop(0, n_layers, body, (e0, e0), unroll=True)
    outT_ref[...] = (acc * (1.0 / (n_layers + 1))).astype(outT_ref.dtype)


def lightgcn_forward_fused(user_emb, item_emb, norm_adj, n_layers, *,
                           precision=None):
    """Small-N path: A and E^T VMEM-resident, all layers fused in one kernel.

    `precision=jax.lax.Precision.HIGHEST` can be passed for exact f32 parity
    with a float32 reference; default precision already matches to ~1e-5 here.
    """
    num_users = user_emb.shape[0]
    ego = jnp.concatenate([user_emb, item_emb], axis=0)      # (N, D)
    N, D = ego.shape
    assert norm_adj.shape == (N, N)
    egoT = ego.T                                             # (D, N) lane-dense

    vmem_bytes = (N * N * norm_adj.dtype.itemsize            # single-buffered A
                  + 4 * D * N * 4                            # E^T in + out (2x buf)
                  + (8 << 20))                               # headroom
    meanT = pl.pallas_call(
        functools.partial(_fused_lightgcn_kernel,
                          n_layers=n_layers, precision=precision),
        out_shape=jax.ShapeDtypeStruct((D, N), jnp.float32),
        grid_spec=pltpu.PrefetchScalarGridSpec(
            num_scalar_prefetch=0,
            grid=(1,),
            in_specs=[
                pl.BlockSpec(memory_space=pl.ANY),           # A stays in HBM
                pl.BlockSpec((D, N), lambda i: (0, 0)),      # E^T
            ],
            out_specs=pl.BlockSpec((D, N), lambda i: (0, 0)),
            scratch_shapes=[pltpu.VMEM((N, N), norm_adj.dtype)],
        ),
        compiler_params=pltpu.CompilerParams(
            dimension_semantics=("arbitrary",),
            vmem_limit_bytes=min(64 << 20, max(vmem_bytes, 16 << 20)),
        ),
    )(norm_adj, egoT)
    mean = meanT.T                                           # (N, D)
    return mean[:num_users], mean[num_users:]


# ----------------------------------------------------------------------------
# Kernel 2 (scalable): one propagation step, transposed layout.
#   grid = (output-column tiles j [parallel], reduction tiles k [arbitrary]).
#   E^T is VMEM-resident (grid-invariant BlockSpec, DMA'd once) in the
#   streaming dtype; only the bf16 A tiles are streamed from HBM.  The f32
#   accumulator lives in VMEM scratch; on the last k step the kernel emits
#   E_{k+1}^T already cast to the streaming dtype AND folds this layer into
#   the running layer-sum in place (input_output_aliases) — no extra per-layer
#   add/cast HBM passes in the wrapper.
# ----------------------------------------------------------------------------
def _propagate_step_kernel(embT_ref, adj_ref, accin_ref,
                           enextT_ref, accout_ref, acc_sc):
    k = pl.program_id(1)

    @pl.when(k == 0)
    def _():
        acc_sc[...] = jnp.zeros_like(acc_sc)

    # E_{k+1}^T[:, j-tile] += E^T[:, k-tile] @ A[k-tile, j-tile]   (A symmetric)
    acc_sc[...] += jnp.dot(embT_ref[k], adj_ref[...],
                           preferred_element_type=jnp.float32)

    @pl.when(k == pl.num_programs(1) - 1)
    def _():
        enextT_ref[0] = acc_sc[...].astype(enextT_ref.dtype)   # next layer's E^T
        accout_ref[...] = accin_ref[...] + acc_sc[...]         # running layer sum


def _propagate_step(embT3, adj, acc_in):
    n_k, D, T = embT3.shape
    Np = n_k * T
    n_j = Np // T
    assert adj.shape == (Np, Np) and acc_in.shape == (D, Np)

    vmem_bytes = (2 * T * T * adj.dtype.itemsize          # A tiles (double-buffered)
                  + 2 * Np * D * embT3.dtype.itemsize     # resident E^T (conservative 2x)
                  + 2 * D * T * embT3.dtype.itemsize      # E^T_{next} tile
                  + 4 * D * T * 4                         # layer-sum in/out tiles
                  + D * T * 4                             # f32 accumulator scratch
                  + (8 << 20))                            # headroom
    return pl.pallas_call(
        _propagate_step_kernel,
        out_shape=(jax.ShapeDtypeStruct((n_k, D, T), embT3.dtype),
                   jax.ShapeDtypeStruct((D, Np), jnp.float32)),
        grid_spec=pltpu.PrefetchScalarGridSpec(
            num_scalar_prefetch=0,
            grid=(n_j, n_k),                               # reduction axis last
            in_specs=[
                pl.BlockSpec((n_k, D, T), lambda j, k: (0, 0, 0)),  # E^T resident
                pl.BlockSpec((T, T), lambda j, k: (k, j)),          # A tile stream
                pl.BlockSpec((D, T), lambda j, k: (0, j)),          # layer sum (read)
            ],
            out_specs=[
                pl.BlockSpec((1, D, T), lambda j, k: (j, 0, 0)),    # E^T_{next}
                pl.BlockSpec((D, T), lambda j, k: (0, j)),          # layer sum (write)
            ],
            scratch_shapes=[pltpu.VMEM((D, T), jnp.float32)],
        ),
        compiler_params=pltpu.CompilerParams(
            dimension_semantics=("parallel", "arbitrary"),
            vmem_limit_bytes=min(64 << 20, max(vmem_bytes, 16 << 20)),
        ),
        input_output_aliases={2: 1},                       # acc_in buffer -> acc_out
    )(embT3, adj, acc_in)


def lightgcn_forward_tiled(user_emb, item_emb, norm_adj, n_layers, *,
                           tile=512, compute_dtype=jnp.bfloat16):
    """Scalable path: bf16 A stream + resident E^T + lane-dense tiled output.

    Works for any N (padded up to the tile).  Production defaults: tile in
    256..1024 (multiple of 128), compute_dtype=bf16 (f32 accumulation inside
    the kernel).
    """
    assert tile % 128 == 0
    num_users = user_emb.shape[0]
    ego = jnp.concatenate([user_emb, item_emb], axis=0).astype(jnp.float32)
    N, D = ego.shape
    assert norm_adj.shape == (N, N)

    T = min(tile, _round_up(N, 128))
    Np = _round_up(N, T)
    pad = Np - N
    adj_p = jnp.pad(norm_adj, ((0, pad), (0, pad))) if pad else norm_adj
    ego_p = jnp.pad(ego, ((0, pad), (0, 0))) if pad else ego

    egoT = ego_p.T                                            # (D, Np), f32
    # (n_k, D, T) layout so the kernel indexes the resident E^T by k-tile.
    embT3 = egoT.reshape(D, Np // T, T).transpose(1, 0, 2).astype(compute_dtype)
    adj_c = adj_p.astype(compute_dtype)                       # symmetric: no transpose
    acc = egoT                                                # running sum incl. E_0 (f32)

    for _ in range(n_layers):
        embT3, acc = _propagate_step(embT3, adj_c, acc)

    mean = (acc * (1.0 / (n_layers + 1))).T[:N]               # (N, D)
    return mean[:num_users], mean[num_users:]


# ----------------------------------------------------------------------------
# Deterministic adjacency / reference
# ----------------------------------------------------------------------------
def build_norm_adj(key, num_users, num_items, density=0.1):
    """Symmetric-normalized bipartite adjacency D^-1/2 A D^-1/2 (dense)."""
    N = num_users + num_items
    r = jax.random.uniform(key, (num_users, num_items))
    inter = (r < density).astype(jnp.float32)
    adj = jnp.zeros((N, N), dtype=jnp.float32)
    adj = adj.at[:num_users, num_users:].set(inter)
    adj = adj.at[num_users:, :num_users].set(inter.T)
    deg = jnp.sum(adj, axis=1)
    d = jnp.where(deg > 0, 1.0 / jnp.sqrt(jnp.maximum(deg, 1e-12)), 0.0)
    return adj * d[:, None] * d[None, :]


def reference_forward(user_emb, item_emb, norm_adj, n_layers):
    ego = jnp.concatenate([user_emb, item_emb], axis=0)
    embs = [ego]
    for _ in range(n_layers):
        ego = norm_adj @ ego
        embs.append(ego)
    mean = jnp.mean(jnp.stack(embs, axis=0), axis=0)
    return mean[:user_emb.shape[0]], mean[user_emb.shape[0]:]


if __name__ == "__main__":
    n_layers, D = 3, 32
    key = jax.random.PRNGKey(0)
    k1, k2, k3, k4, k5, k6 = jax.random.split(key, 6)

    # --- Case 1: N = 128 — fused VMEM-resident path -------------------------
    nu1, ni1 = 48, 80
    u1 = jax.random.uniform(k1, (nu1, D), minval=-0.05, maxval=0.05)
    i1 = jax.random.uniform(k2, (ni1, D), minval=-0.05, maxval=0.05)
    a1 = build_norm_adj(k3, nu1, ni1)
    ref_u1, ref_i1 = reference_forward(u1, i1, a1, n_layers)

    fused = jax.jit(functools.partial(lightgcn_forward_fused, n_layers=n_layers))
    fu, fi = fused(u1, i1, a1)
    jax.block_until_ready((fu, fi))
    # f32 path (MXU default-precision f32 matmul).
    assert jnp.allclose(fu, ref_u1, atol=1e-4), "fused user mismatch"
    assert jnp.allclose(fi, ref_i1, atol=1e-4), "fused item mismatch"

    # --- Case 2: N = 500 — scalable tiled path (pads to 512, multi-tile grid)
    nu2, ni2 = 200, 300
    u2 = jax.random.uniform(k4, (nu2, D), minval=-0.05, maxval=0.05)
    i2 = jax.random.uniform(k5, (ni2, D), minval=-0.05, maxval=0.05)
    a2 = build_norm_adj(k6, nu2, ni2, density=0.05)
    ref_u2, ref_i2 = reference_forward(u2, i2, a2, n_layers)

    # tile=128 -> 4x4 grid (exercises the k-reduction / epilogue paths)
    tiled128 = jax.jit(functools.partial(
        lightgcn_forward_tiled, n_layers=n_layers, tile=128))
    tu, ti = tiled128(u2, i2, a2)
    jax.block_until_ready((tu, ti))
    assert jnp.allclose(tu, ref_u2, atol=5e-3), "tiled128 user mismatch"
    assert jnp.allclose(ti, ref_i2, atol=5e-3), "tiled128 item mismatch"

    # tile=256 -> 2x2 grid (different tiling, same bf16 A stream)
    tiled256 = jax.jit(functools.partial(
        lightgcn_forward_tiled, n_layers=n_layers, tile=256))
    tu2, ti2 = tiled256(u2, i2, a2)
    jax.block_until_ready((tu2, ti2))
    assert jnp.allclose(tu2, ref_u2, atol=5e-3), "tiled256 user mismatch"
    assert jnp.allclose(ti2, ref_i2, atol=5e-3), "tiled256 item mismatch"

    print("KERNEL_OK")
</pallas_src>

<mosaic_0001>
module attributes {stable_mosaic.version = 11 : i64} {
  func.func @_fused_lightgcn_kernel(%arg0: i32, %arg1: memref<128x128xf32, #tpu.memory_space<any>>, %arg2: memref<32x128xf32, #tpu.memory_space<vmem>>, %arg3: memref<32x128xf32, #tpu.memory_space<vmem>>, %arg4: memref<128x128xf32, #tpu.memory_space<vmem>>) attributes {dimension_semantics = [#tpu.dimension_semantics<arbitrary>], iteration_bounds = array<i64: 1>, scalar_prefetch = 0 : i64, scratch_operands = 1 : i64, tpu.core_type = #tpu.core_type<tc>, window_params = [{}, {pipeline_mode = #tpu.pipeline_mode<synchronous>, transform_indices = @transform_1, window_bounds = array<i64: 32, 128>}, {pipeline_mode = #tpu.pipeline_mode<synchronous>, transform_indices = @transform_2, window_bounds = array<i64: 32, 128>}]} {
    "tpu.region"() ({
      %11 = tpu.sem_alloc : memref<!tpu.dma_semaphore, #tpu.memory_space<semaphore_mem>>
      tpu.enqueue_dma source(%arg1 : memref<128x128xf32, #tpu.memory_space<any>>) target(%arg4 : memref<128x128xf32, #tpu.memory_space<vmem>>) target_semaphore(%11 : memref<!tpu.dma_semaphore, #tpu.memory_space<semaphore_mem>>)
      tpu.wait_dma2 semaphore(%11 : memref<!tpu.dma_semaphore, #tpu.memory_space<semaphore_mem>>) src(%arg1 : memref<128x128xf32, #tpu.memory_space<any>>) dst(%arg4 : memref<128x128xf32, #tpu.memory_space<vmem>>)
      tpu.yield
    }) : () -> ()
    %c0 = arith.constant 0 : index
    %c0_0 = arith.constant 0 : index
    %0 = vector.load %arg4[%c0, %c0_0] : memref<128x128xf32, #tpu.memory_space<vmem>>, vector<128x128xf32>
    %c0_1 = arith.constant 0 : index
    %c0_2 = arith.constant 0 : index
    %1 = vector.load %arg2[%c0_1, %c0_2] : memref<32x128xf32, #tpu.memory_space<vmem>>, vector<32x128xf32>
    %c0_i32 = arith.constant 0 : i32
    %cst = arith.constant dense<0.000000e+00> : vector<32x128xf32>
    %2 = tpu.matmul %1, %0, %cst {dimension_numbers = #tpu.dot_dimension_numbers<[1], [0], [0], [1], [0, 0, 1, 1], [], []>} : vector<32x128xf32>, vector<128x128xf32>, vector<32x128xf32> -> vector<32x128xf32>
    %3 = arith.addf %1, %2 : vector<32x128xf32>
    %c1_i32 = arith.constant 1 : i32
    %cst_3 = arith.constant dense<0.000000e+00> : vector<32x128xf32>
    %4 = tpu.matmul %2, %0, %cst_3 {dimension_numbers = #tpu.dot_dimension_numbers<[1], [0], [0], [1], [0, 0, 1, 1], [], []>} : vector<32x128xf32>, vector<128x128xf32>, vector<32x128xf32> -> vector<32x128xf32>
    %5 = arith.addf %3, %4 : vector<32x128xf32>
    %c2_i32 = arith.constant 2 : i32
    %cst_4 = arith.constant dense<0.000000e+00> : vector<32x128xf32>
    %6 = tpu.matmul %4, %0, %cst_4 {dimension_numbers = #tpu.dot_dimension_numbers<[1], [0], [0], [1], [0, 0, 1, 1], [], []>} : vector<32x128xf32>, vector<128x128xf32>, vector<32x128xf32> -> vector<32x128xf32>
    %7 = arith.addf %5, %6 : vector<32x128xf32>
    %cst_5 = arith.constant 2.500000e-01 : f32
    %8 = vector.broadcast %cst_5 : f32 to vector<32x128xf32>
    %9 = arith.mulf %7, %8 : vector<32x128xf32>
    %c0_6 = arith.constant 0 : index
    %c0_7 = arith.constant 0 : index
    %10 = vector.load %arg3[%c0_6, %c0_7] : memref<32x128xf32, #tpu.memory_space<vmem>>, vector<32x128xf32>
    tpu.vector_store %arg3[%c0_6, %c0_7], %9 {strides = array<i32>} : memref<32x128xf32, #tpu.memory_space<vmem>>, vector<32x128xf32>,
    return
  }
  func.func @transform_1(%arg0: i32) -> (i32, i32) {
    %c0_i32 = arith.constant 0 : i32
    %c0_i32_0 = arith.constant 0 : i32
    %c0_i32_1 = arith.constant 0 : i32
    return %c0_i32, %c0_i32_0 : i32, i32
  }
  func.func @transform_2(%arg0: i32) -> (i32, i32) {
    %c0_i32 = arith.constant 0 : i32
    %c0_i32_0 = arith.constant 0 : i32
    %c0_i32_1 = arith.constant 0 : i32
    return %c0_i32, %c0_i32_0 : i32, i32
  }
}

</mosaic_0001>

<bundles_post_ra>
// kernel: lightgcn_forward_fused.1
= control target key start
LH: loop header
LB: loop body
LE: loop exit
PB: predicated region body
PF: predicated region fallthrough
CT: control target
= control target key end

     0   :  { %s633_s9 = smov [#allocation2]   ;;  %s739_s0 = inlined_call_operand.hbm [shape: f32[128,128], index: 0, kind: input, shape index: {}]   ;;  %s740_s1 = inlined_call_operand.vmem [shape: f32[32,128], index: 1, kind: input, shape index: {}]   ;;  %s741_s2 = inlined_call_operand.vmem [shape: f32[32,128], index: 2, kind: output, shape index: {}]  }
   0x1   :  { %s16_s10 = sshll.u32 %s633_s9, 4  ;;  %s609_s13 = scalar_lea.hbm %s739_s0, 2048  ;;  %s17_s10 = int_to_ptr.vmem [resolvable:$true] %s16_s10 }
   0x2   :  { %p610_p0 = scmp.ne.s32.totalorder %s739_s0, %s609_s13  ;;  %p613_p1 = scmp.lt.u32.totalorder %s609_s13, %s739_s0 }
   0x4   :  { %p615_p2 = pnand %p613_p1, %p610_p0 }
   0x6   :  { %618 = shalt.err (!%p615_p2)  }
   0x7   :  { %s619_s18 = scalar_lea.vmem %s17_s10, 2048  ;;  %p624_p4 = scmp.lt.s32.totalorder %s17_s10, %s17_s10 }
   0x8   :  { %p620_p3 = scmp.ne.s32.totalorder %s17_s10, %s619_s18  ;;  %p625_p5 = scmp.lt.s32.totalorder %s619_s18, %s619_s18 }
   0xa   :  { %p626_p6 = por %p625_p5, %p624_p4 }
   0xc   :  { %p627_p7 = pnand %p626_p6, %p620_p3 }
   0xe   :  { %630 = shalt.err (!%p627_p7)  }
   0xf   :  { %19 = dma.hbm_to_vmem [thread:$0]  %s739_s0, 2048, %s17_s10, [#allocation3] }
  0x10   :  { %631 = dma.done.wait [#allocation3], 2048 }
  0x11   :  { %632 = vsyncadd [#allocation3], 4294965248  ;;  %v23_v0 = vld [vmem:[#allocation2] sm:$0xff]  ;;  %v24_v1 = vld [vmem:[#allocation2 + $0x8] sm:$0xff] }
  0x12   :  { %v25_v2 = vld [vmem:[#allocation2 + $0x10] sm:$0xff]  ;;  %v661_v3 = vpack.c.bf16 %v24_v1, %v23_v0  ;;  %v26_v4 = vld [vmem:[#allocation2 + $0x18] sm:$0xff]  ;;  %v27_v6 = vld [vmem:[#allocation2 + $0x20] sm:$0xff] }
  0x13   :  { %v663_v5 = vpack.c.bf16 %v26_v4, %v25_v2  ;;  %v28_v7 = vld [vmem:[#allocation2 + $0x28] sm:$0xff]  ;;  %v675_v9 = vld [vmem:[%s740_s1] sm:$0xff]  ;;  %v29_v10 = vld [vmem:[#allocation2 + $0x30] sm:$0xff] }
  0x14   :  { %497 = vmatprep.subr.bf16.mxu0 %v661_v3  ;;  %529 = vmatprep.subr.bf16.mxu1 %v661_v3  ;;  %v670_v8 = vpack.c.bf16 %v28_v7, %v27_v6  ;;  %v30_v11 = vld [vmem:[#allocation2 + $0x38] sm:$0xff]  ;;  %v31_v13 = vld [vmem:[#allocation2 + $0x40] sm:$0xff]  ;;  %v32_v14 = vld [vmem:[#allocation2 + $0x48] sm:$0xff] }
  0x15   :  { %499 = vmatpush3.bf16.msra.mxu0 %v661_v3  ;;  %531 = vmatpush3.bf16.msra.mxu1 %v661_v3  ;;  %v682_v12 = vpack.c.bf16 %v30_v11, %v29_v10  ;;  %v688_v15 = vpack.c.bf16 %v32_v14, %v31_v13  ;;  %v33_v16 = vld [vmem:[#allocation2 + $0x50] sm:$0xff]  ;;  %v34_v17 = vld [vmem:[#allocation2 + $0x58] sm:$0xff]  ;;  %v35_v19 = vld [vmem:[#allocation2 + $0x60] sm:$0xff] }
  0x16   :  { %501 = vmatprep.subr.bf16.mxu0 %v663_v5  ;;  %533 = vmatprep.subr.bf16.mxu1 %v663_v5  ;;  %v516_v18 = vpack.c.bf16 %v34_v17, %v33_v16  ;;  %v36_v20 = vld [vmem:[#allocation2 + $0x68] sm:$0xff]  ;;  %v37_v22 = vld [vmem:[#allocation2 + $0x70] sm:$0xff]  ;;  %v38_v23 = vld [vmem:[#allocation2 + $0x78] sm:$0xff] }
  0x17   :  { %414 = vmatprep.mubr.f32.mxu0 %v675_v9  ;;  %v520_v21 = vpack.c.bf16 %v36_v20, %v35_v19  ;;  %v524_v24 = vpack.c.bf16 %v38_v23, %v37_v22  ;;  %v40_v25 = vld [vmem:[%s740_s1 + $0x8] sm:$0xff]  ;;  %v41_v26 = vld [vmem:[%s740_s1 + $0x10] sm:$0xff]  ;;  %v42_v27 = vld [vmem:[%s740_s1 + $0x18] sm:$0xff] }
  0x19   :  { %503 = vmatpush3.bf16.msra.mxu0 %v663_v5  ;;  %535 = vmatpush3.bf16.msra.mxu1 %v663_v5 }
  0x1a   :  { %505 = vmatprep.subr.bf16.mxu0 %v670_v8  ;;  %537 = vmatprep.subr.bf16.mxu1 %v670_v8 }
  0x1d   :  { %507 = vmatpush3.bf16.msra.mxu0 %v670_v8  ;;  %539 = vmatpush3.bf16.msra.mxu1 %v670_v8 }
  0x1e   :  { %509 = vmatprep.subr.bf16.mxu0 %v682_v12  ;;  %541 = vmatprep.subr.bf16.mxu1 %v682_v12 }
  0x21   :  { %511 = vmatpush3.bf16.msra.mxu0 %v682_v12  ;;  %543 = vmatpush3.bf16.msra.mxu1 %v682_v12 }
  0x22   :  { %513 = vmatprep.subr.bf16.mxu0 %v688_v15  ;;  %545 = vmatprep.subr.bf16.mxu1 %v688_v15 }
  0x25   :  { %515 = vmatpush3.bf16.msra.mxu0 %v688_v15  ;;  %547 = vmatpush3.bf16.msra.mxu1 %v688_v15 }
  0x26   :  { %517 = vmatprep.subr.bf16.mxu0 %v516_v18  ;;  %549 = vmatprep.subr.bf16.mxu1 %v516_v18 }
  0x29   :  { %519 = vmatpush3.bf16.msra.mxu0 %v516_v18  ;;  %551 = vmatpush3.bf16.msra.mxu1 %v516_v18 }
  0x2a   :  { %521 = vmatprep.subr.bf16.mxu0 %v520_v21  ;;  %553 = vmatprep.subr.bf16.mxu1 %v520_v21 }
  0x2d   :  { %523 = vmatpush3.bf16.msra.mxu0 %v520_v21  ;;  %555 = vmatpush3.bf16.msra.mxu1 %v520_v21 }
  0x2e   :  { %525 = vmatprep.subr.bf16.mxu0 %v524_v24  ;;  %557 = vmatprep.subr.bf16.mxu1 %v524_v24 }
  0x31   :  { %527 = vmatpush3.bf16.msra.mxu0 %v524_v24  ;;  %559 = vmatpush3.bf16.msra.mxu1 %v524_v24 }
  0x32   :  { %561 = vmatprep.subr.bf16.mxu0 %v661_v3  ;;  %592 = vmatprep.subr.bf16.mxu1 %v661_v3 }
  0x34   :  { %415 = vmatmul.mubr.f32.vlgmr.msra.gmra.mrb[0].mxu0 %v40_v25 }
  0x35   :  { %417 = vmatprep.mubr.f32.mxu0 %v41_v26  ;;  %563 = vmatpush3.bf16.msra.mxu0 %v661_v3 }
  0x36   :  { %565 = vmatprep.subr.bf16.mxu0 %v663_v5 }
  0x38   :  { %418 = vmatmul.mubr.f32.gmra.mrb[2].mxu0 %v42_v27 }
  0x39   :  { %567 = vmatpush3.bf16.msra.mxu0 %v663_v5 }
  0x3a   :  { %569 = vmatprep.subr.bf16.mxu0 %v670_v8 }
  0x3d   :  { %571 = vmatpush3.bf16.msra.mxu0 %v670_v8 }
  0x3e   :  { %573 = vmatprep.subr.bf16.mxu0 %v682_v12 }
  0x41   :  { %575 = vmatpush3.bf16.msra.mxu0 %v682_v12 }
  0x42   :  { %577 = vmatprep.subr.bf16.mxu0 %v688_v15 }
  0x45   :  { %579 = vmatpush3.bf16.msra.mxu0 %v688_v15 }
  0x46   :  { %581 = vmatprep.subr.bf16.mxu0 %v516_v18 }
  0x49   :  { %583 = vmatpush3.bf16.msra.mxu0 %v516_v18 }
  0x4a   :  { %585 = vmatprep.subr.bf16.mxu0 %v520_v21 }
  0x4d   :  { %587 = vmatpush3.bf16.msra.mxu0 %v520_v21 }
  0x4e   :  { %589 = vmatprep.subr.bf16.mxu0 %v524_v24 }
  0x51   :  { %591 = vmatpush3.bf16.msra.mxu0 %v524_v24 }
 0x107   :  { %v416_v28 = vpop.f32.mrb[0].mxu0 }
 0x108   :  { %v109_v29 = vpop.f32.mrb[1].mxu0  ;;  %v129_v32 = vadd.f32 %v416_v28, %v40_v25 }
 0x109   :  { %452 = vmatprep.mubr.f32.mxu1 %v109_v29  ;;  %v128_v33 = vadd.f32 %v109_v29, %v675_v9 }
 0x10a   :  { %453 = vmatmul.mubr.f32.vlgmr.msra.gmra.mrb[0].mxu1 %v416_v28 }
 0x10b   :  { %v419_v30 = vpop.f32.mrb[2].mxu0  ;;  %600 = vmatpush3.bf16.msra.mxu1 %v661_v3 }
 0x10c   :  { %v119_v31 = vpop.f32.mrb[3].mxu0  ;;  %593 = vmatprep.subr.bf16.mxu1 %v663_v5  ;;  %v131_v38 = vadd.f32 %v419_v30, %v42_v27 }
 0x10d   :  { %455 = vmatprep.mubr.f32.mxu1 %v119_v31  ;;  %v130_v39 = vadd.f32 %v119_v31, %v41_v26 }
 0x10e   :  { %456 = vmatmul.mubr.f32.gmra.mrb[2].mxu1 %v419_v30 }
 0x10f   :  { %601 = vmatpush3.bf16.msra.mxu1 %v663_v5 }
 0x110   :  { %594 = vmatprep.subr.bf16.mxu1 %v670_v8 }
 0x113   :  { %602 = vmatpush3.bf16.msra.mxu1 %v670_v8 }
 0x114   :  { %595 = vmatprep.subr.bf16.mxu1 %v682_v12 }
 0x117   :  { %603 = vmatpush3.bf16.msra.mxu1 %v682_v12 }
 0x118   :  { %596 = vmatprep.subr.bf16.mxu1 %v688_v15 }
 0x11b   :  { %604 = vmatpush3.bf16.msra.mxu1 %v688_v15 }
 0x11c   :  { %597 = vmatprep.subr.bf16.mxu1 %v516_v18 }
 0x11f   :  { %605 = vmatpush3.bf16.msra.mxu1 %v516_v18 }
 0x120   :  { %598 = vmatprep.subr.bf16.mxu1 %v520_v21 }
 0x123   :  { %606 = vmatpush3.bf16.msra.mxu1 %v520_v21 }
 0x124   :  { %599 = vmatprep.subr.bf16.mxu1 %v524_v24 }
 0x127   :  { %607 = vmatpush3.bf16.msra.mxu1 %v524_v24 }
 0x1dd   :  { %v454_v34 = vpop.f32.mrb[0].mxu1 }
 0x1de   :  { %v218_v35 = vadd.f32 %v454_v34, %v129_v32  ;;  %v198_v36 = vpop.f32.mrb[1].mxu1 }
 0x1df   :  { %v217_v37 = vadd.f32 %v198_v36, %v128_v33  ;;  %490 = vmatprep.mubr.f32.mxu0 %v198_v36 }
 0x1e0   :  { %491 = vmatmul.mubr.f32.vlgmr.msra.gmra.mrb[4].mxu0 %v454_v34 }
 0x1e1   :  { %v457_v40 = vpop.f32.mrb[2].mxu1 }
 0x1e2   :  { %v220_v41 = vadd.f32 %v457_v40, %v131_v38  ;;  %v208_v42 = vpop.f32.mrb[3].mxu1 }
 0x1e3   :  { %v219_v43 = vadd.f32 %v208_v42, %v130_v39  ;;  %493 = vmatprep.mubr.f32.mxu1 %v208_v42 }
 0x1e4   :  { %494 = vmatmul.mubr.f32.vlgmr.msra.gmra.mrb[4].mxu1 %v457_v40 }
 0x2b3   :  { %v492_v44 = vpop.f32.mrb[4].mxu0 }
 0x2b4   :  { %v307_v45 = vadd.f32 %v492_v44, %v218_v35  ;;  %v287_v46 = vpop.f32.mrb[5].mxu0 }
 0x2b5   :  { %v306_v47 = vadd.f32 %v287_v46, %v217_v37 }
 0x2b6   :  { %v311_v48 = vmul.f32 0.25, %v307_v45 }
 0x2b7   :  { %v310_v49 = vmul.f32 0.25, %v306_v47  ;;  %v495_v50 = vpop.f32.mrb[4].mxu1 }
 0x2b8   :  { %315 = vst [vmem:[%s741_s2 + $0x8] sm:$0xff] %v311_v48  ;;  %v309_v51 = vadd.f32 %v495_v50, %v220_v41  ;;  %v297_v52 = vpop.f32.mrb[5].mxu1 }
 0x2b9   :  { %314 = vst [vmem:[%s741_s2] sm:$0xff] %v310_v49  ;;  %v308_v53 = vadd.f32 %v297_v52, %v219_v43 }
 0x2ba   :  { %v313_v54 = vmul.f32 0.25, %v309_v51 }
 0x2bb   :  { %v312_v55 = vmul.f32 0.25, %v308_v53 }
 0x2bc   :  { %317 = vst [vmem:[%s741_s2 + $0x18] sm:$0xff] %v313_v54 }
 0x2bd   :  { %316 = vst [vmem:[%s741_s2 + $0x10] sm:$0xff] %v312_v55 }

</bundles_post_ra>
